<compile_context>
chip_gen: v7x
topology: tpu7x:2x2x1
jax: 0.10.0
libtpu: 0.0.40
codegen_flags: <defaults>
</compile_context>

<pallas_src>
import math

import jax
import jax.numpy as jnp
from jax.experimental import pallas as pl
from jax.experimental.pallas import tpu as pltpu


_DEFAULT_CHUNK_BYTES = 2 * 1024 * 1024   # ~2 MiB per DMA (review: 1-4 MiB sweet spot)
_MAX_OUTSTANDING_DMAS = 8                # review: 4-8 streams to approach v6e/v7x HBM roofline
_MIN_PALLAS_BYTES = 2 * 1024 * 1024      # below this, jnp.concatenate wins (launch overhead)


def _plan_chunks(channel_sizes, bytes_per_channel, chunk_bytes, max_outstanding):
    """Static channel-chunk plan: per input, a list of (src_c0, c_count, dst_c0).

    Splits each input's channels so that each chunk is ~chunk_bytes and the
    total number of in-flight DMAs stays <= max_outstanding (v5e caution:
    don't over-split; extra DMAs only add descriptor/wait overhead).
    """
    per_input_cap = max(1, max_outstanding // max(1, len(channel_sizes)))
    plans = []
    dst_off = 0
    for c in channel_sizes:
        nbytes = c * bytes_per_channel
        want = max(1, math.ceil(nbytes / max(1, chunk_bytes)))
        k = int(min(want, c, per_input_cap))
        base, rem = divmod(c, k)
        plan = []
        src = 0
        for j in range(k):
            cc = base + (1 if j < rem else 0)
            if cc > 0:
                plan.append((src, cc, dst_off + src))
            src += cc
        plans.append(plan)
        dst_off += c
    return plans


def _make_concat_dma_kernel(chunk_plans):
    """Kernel that DMAs each (statically planned) channel chunk into the output."""

    def concat_kernel(*refs):
        # refs = (in_hbm_0, ..., in_hbm_{k-1}, out_hbm, dma_sems)
        out_ref = refs[-2]
        sems = refs[-1]
        in_refs = refs[:-2]
        copies = []
        sem_idx = 0
        # Start every HBM->HBM DMA first so all chunks are in flight together.
        # NOTE: destination byte offsets are dst_c * H * W * itemsize per batch
        # row; for typical YOLO feature maps (H*W a multiple of a power of two)
        # these are 512 B aligned. Misaligned channel boundaries only reduce
        # burst efficiency, never correctness.
        for in_ref, plan in zip(in_refs, chunk_plans):
            for (src_c, cc, dst_c) in plan:
                cp = pltpu.make_async_copy(
                    in_ref.at[:, src_c:src_c + cc],      # static src channel slice
                    out_ref.at[:, dst_c:dst_c + cc],     # disjoint static dst slice
                    sems.at[sem_idx],                    # one DMA semaphore per chunk
                )
                cp.start()
                copies.append(cp)
                sem_idx += 1
        # Then wait on all of them.
        for cp in copies:
            cp.wait()

    return concat_kernel


def feature_concat_pallas(tensors, *, force_pallas=False,
                          chunk_bytes=_DEFAULT_CHUNK_BYTES,
                          max_outstanding=_MAX_OUTSTANDING_DMAS):
    """Concatenate NCHW tensors along the channel axis (dim 1) via HBM->HBM DMA."""
    assert len(tensors) >= 1
    if len(tensors) == 1:
        return tensors[0]

    n, _, h, w = tensors[0].shape
    dtype = tensors[0].dtype
    for t in tensors:
        assert t.shape[0] == n and t.shape[2] == h and t.shape[3] == w
        assert t.dtype == dtype

    channel_sizes = [int(t.shape[1]) for t in tensors]
    c_total = sum(channel_sizes)
    itemsize = jnp.dtype(dtype).itemsize
    bytes_per_channel = n * h * w * itemsize
    total_bytes = c_total * bytes_per_channel

    # Small-size fallback: launch + DMA issue/wait overhead dominates, and
    # XLA's native concat can fuse into consumers.
    if not force_pallas and total_bytes < _MIN_PALLAS_BYTES:
        return jnp.concatenate(tensors, axis=1)

    chunk_plans = _plan_chunks(channel_sizes, bytes_per_channel,
                               chunk_bytes, max_outstanding)
    num_chunks_total = sum(len(p) for p in chunk_plans)

    kernel = _make_concat_dma_kernel(chunk_plans)

    out = pl.pallas_call(
        kernel,
        out_shape=jax.ShapeDtypeStruct((n, c_total, h, w), dtype),
        # Leave everything in HBM: pure copy => no VMEM round trip at all.
        in_specs=[pl.BlockSpec(memory_space=pl.ANY) for _ in tensors],
        out_specs=pl.BlockSpec(memory_space=pl.ANY),
        scratch_shapes=[pltpu.SemaphoreType.DMA((num_chunks_total,))],
        # Output is only ever written via DMA (never a ref store) -> keep
        # has_side_effects=True so it can't be DCE'd/reordered.
        compiler_params=pltpu.CompilerParams(has_side_effects=True),
        # Purely bandwidth-bound: read + write of the full output.
        cost_estimate=pl.CostEstimate(
            flops=0, transcendentals=0, bytes_accessed=2 * total_bytes),
    )(*tensors)

    return out


class FeatureConcat:
    """JAX/Pallas equivalent of the PyTorch FeatureConcat module."""

    def __init__(self, layers):
        self.layers = layers
        self.multiple = len(layers) > 1

    def __call__(self, x, outputs, **kw):
        # `x` is unused by the reference forward (kept for signature parity).
        if self.multiple:
            return feature_concat_pallas([outputs[i] for i in self.layers], **kw)
        return outputs[self.layers[0]]


if __name__ == "__main__":
    key = jax.random.PRNGKey(0)
    k1, k2, k3, kx = jax.random.split(key, 4)

    # Small NCHW feature maps from "previous layers" (different channel counts).
    n, h, w = 2, 16, 16
    out0 = jax.random.normal(k1, (n, 4, h, w), dtype=jnp.float32)
    out1 = jax.random.normal(k2, (n, 8, h, w), dtype=jnp.float32)
    out2 = jax.random.normal(k3, (n, 4, h, w), dtype=jnp.float32)
    x = jax.random.normal(kx, (n, 4, h, w), dtype=jnp.float32)  # unused, parity only

    outputs = {0: out0, 1: out1, 2: out2}
    ref = jnp.concatenate([out0, out1, out2], axis=1)

    mod = FeatureConcat(layers=[0, 1, 2])

    # 1) Pallas DMA path, default chunking (one chunk per input at this size).
    y = jax.block_until_ready(mod(x, outputs, force_pallas=True))
    assert y.shape == (n, 16, h, w), y.shape
    assert jnp.array_equal(y, ref), "concat mismatch (default chunking)"

    # 2) Pallas DMA path, forced multi-chunk (exercises concurrent chunked DMAs).
    y_chunked = jax.block_until_ready(
        mod(x, outputs, force_pallas=True, chunk_bytes=1024))
    assert jnp.array_equal(y_chunked, ref), "concat mismatch (chunked DMAs)"

    # 3) Auto path: this small case falls back to jnp.concatenate.
    y_auto = jax.block_until_ready(mod(x, outputs))
    assert jnp.array_equal(y_auto, ref), "concat mismatch (fallback)"

    # 4) Single-layer case: passthrough.
    mod_single = FeatureConcat(layers=[1])
    y1 = jax.block_until_ready(mod_single(x, outputs))
    assert jnp.array_equal(y1, out1), "passthrough mismatch"

    print("KERNEL_OK")
</pallas_src>

<mosaic_0001>
module attributes {stable_mosaic.version = 11 : i64} {
  func.func @concat_kernel(%arg0: memref<2x4x16x16xf32, #tpu.memory_space<any>>, %arg1: memref<2x8x16x16xf32, #tpu.memory_space<any>>, %arg2: memref<2x4x16x16xf32, #tpu.memory_space<any>>, %arg3: memref<2x16x16x16xf32, #tpu.memory_space<any>>, %arg4: memref<3x!tpu.dma_semaphore, #tpu.memory_space<semaphore_mem>>) attributes {dimension_semantics = [], scalar_prefetch = 0 : i64, scratch_operands = 1 : i64, tpu.core_type = #tpu.core_type<tc>} {
    %c0_i32 = arith.constant 0 : i32
    %c0_i32_0 = arith.constant 0 : i32
    %c0_i32_1 = arith.constant 0 : i32
    %c0_i32_2 = arith.constant 0 : i32
    %c0_i32_3 = arith.constant 0 : i32
    %0 = tpu.memref_slice %arg0[%c0_i32_0, %c0_i32_1, %c0_i32_2, %c0_i32_3] : memref<2x4x16x16xf32, #tpu.memory_space<any>> -> memref<2x4x16x16xf32, #tpu.memory_space<any>>
    %c0_i32_4 = arith.constant 0 : i32
    %c0_i32_5 = arith.constant 0 : i32
    %c0_i32_6 = arith.constant 0 : i32
    %c0_i32_7 = arith.constant 0 : i32
    %1 = tpu.memref_slice %arg3[%c0_i32_4, %c0_i32_5, %c0_i32_6, %c0_i32_7] : memref<2x16x16x16xf32, #tpu.memory_space<any>> -> memref<2x4x16x16xf32, #tpu.memory_space<any>>
    %2 = tpu.memref_slice %arg4[%c0_i32] : memref<3x!tpu.dma_semaphore, #tpu.memory_space<semaphore_mem>> -> memref<1x!tpu.dma_semaphore, #tpu.memory_space<semaphore_mem>>
    %3 = tpu.memref_squeeze %2 : memref<1x!tpu.dma_semaphore, #tpu.memory_space<semaphore_mem>> -> memref<!tpu.dma_semaphore, #tpu.memory_space<semaphore_mem>>
    tpu.enqueue_dma source(%0 : memref<2x4x16x16xf32, #tpu.memory_space<any>>) target(%1 : memref<2x4x16x16xf32, #tpu.memory_space<any>>) target_semaphore(%3 : memref<!tpu.dma_semaphore, #tpu.memory_space<semaphore_mem>>)
    %c1_i32 = arith.constant 1 : i32
    %c0_i32_8 = arith.constant 0 : i32
    %c0_i32_9 = arith.constant 0 : i32
    %c0_i32_10 = arith.constant 0 : i32
    %c0_i32_11 = arith.constant 0 : i32
    %4 = tpu.memref_slice %arg1[%c0_i32_8, %c0_i32_9, %c0_i32_10, %c0_i32_11] : memref<2x8x16x16xf32, #tpu.memory_space<any>> -> memref<2x8x16x16xf32, #tpu.memory_space<any>>
    %c0_i32_12 = arith.constant 0 : i32
    %c4_i32 = arith.constant 4 : i32
    %c0_i32_13 = arith.constant 0 : i32
    %c0_i32_14 = arith.constant 0 : i32
    %5 = tpu.memref_slice %arg3[%c0_i32_12, %c4_i32, %c0_i32_13, %c0_i32_14] : memref<2x16x16x16xf32, #tpu.memory_space<any>> -> memref<2x8x16x16xf32, #tpu.memory_space<any>>
    %6 = tpu.memref_slice %arg4[%c1_i32] : memref<3x!tpu.dma_semaphore, #tpu.memory_space<semaphore_mem>> -> memref<1x!tpu.dma_semaphore, #tpu.memory_space<semaphore_mem>>
    %7 = tpu.memref_squeeze %6 : memref<1x!tpu.dma_semaphore, #tpu.memory_space<semaphore_mem>> -> memref<!tpu.dma_semaphore, #tpu.memory_space<semaphore_mem>>
    tpu.enqueue_dma source(%4 : memref<2x8x16x16xf32, #tpu.memory_space<any>>) target(%5 : memref<2x8x16x16xf32, #tpu.memory_space<any>>) target_semaphore(%7 : memref<!tpu.dma_semaphore, #tpu.memory_space<semaphore_mem>>)
    %c2_i32 = arith.constant 2 : i32
    %c0_i32_15 = arith.constant 0 : i32
    %c0_i32_16 = arith.constant 0 : i32
    %c0_i32_17 = arith.constant 0 : i32
    %c0_i32_18 = arith.constant 0 : i32
    %8 = tpu.memref_slice %arg2[%c0_i32_15, %c0_i32_16, %c0_i32_17, %c0_i32_18] : memref<2x4x16x16xf32, #tpu.memory_space<any>> -> memref<2x4x16x16xf32, #tpu.memory_space<any>>
    %c0_i32_19 = arith.constant 0 : i32
    %c12_i32 = arith.constant 12 : i32
    %c0_i32_20 = arith.constant 0 : i32
    %c0_i32_21 = arith.constant 0 : i32
    %9 = tpu.memref_slice %arg3[%c0_i32_19, %c12_i32, %c0_i32_20, %c0_i32_21] : memref<2x16x16x16xf32, #tpu.memory_space<any>> -> memref<2x4x16x16xf32, #tpu.memory_space<any>>
    %10 = tpu.memref_slice %arg4[%c2_i32] : memref<3x!tpu.dma_semaphore, #tpu.memory_space<semaphore_mem>> -> memref<1x!tpu.dma_semaphore, #tpu.memory_space<semaphore_mem>>
    %11 = tpu.memref_squeeze %10 : memref<1x!tpu.dma_semaphore, #tpu.memory_space<semaphore_mem>> -> memref<!tpu.dma_semaphore, #tpu.memory_space<semaphore_mem>>
    tpu.enqueue_dma source(%8 : memref<2x4x16x16xf32, #tpu.memory_space<any>>) target(%9 : memref<2x4x16x16xf32, #tpu.memory_space<any>>) target_semaphore(%11 : memref<!tpu.dma_semaphore, #tpu.memory_space<semaphore_mem>>)
    %c0_i32_22 = arith.constant 0 : i32
    %c0_i32_23 = arith.constant 0 : i32
    %c0_i32_24 = arith.constant 0 : i32
    %c0_i32_25 = arith.constant 0 : i32
    %c0_i32_26 = arith.constant 0 : i32
    %12 = tpu.memref_slice %arg0[%c0_i32_23, %c0_i32_24, %c0_i32_25, %c0_i32_26] : memref<2x4x16x16xf32, #tpu.memory_space<any>> -> memref<2x4x16x16xf32, #tpu.memory_space<any>>
    %c0_i32_27 = arith.constant 0 : i32
    %c0_i32_28 = arith.constant 0 : i32
    %c0_i32_29 = arith.constant 0 : i32
    %c0_i32_30 = arith.constant 0 : i32
    %13 = tpu.memref_slice %arg3[%c0_i32_27, %c0_i32_28, %c0_i32_29, %c0_i32_30] : memref<2x16x16x16xf32, #tpu.memory_space<any>> -> memref<2x4x16x16xf32, #tpu.memory_space<any>>
    %14 = tpu.memref_slice %arg4[%c0_i32_22] : memref<3x!tpu.dma_semaphore, #tpu.memory_space<semaphore_mem>> -> memref<1x!tpu.dma_semaphore, #tpu.memory_space<semaphore_mem>>
    %15 = tpu.memref_squeeze %14 : memref<1x!tpu.dma_semaphore, #tpu.memory_space<semaphore_mem>> -> memref<!tpu.dma_semaphore, #tpu.memory_space<semaphore_mem>>
    tpu.wait_dma2 semaphore(%15 : memref<!tpu.dma_semaphore, #tpu.memory_space<semaphore_mem>>) src(%12 : memref<2x4x16x16xf32, #tpu.memory_space<any>>) dst(%13 : memref<2x4x16x16xf32, #tpu.memory_space<any>>)
    %c1_i32_31 = arith.constant 1 : i32
    %c0_i32_32 = arith.constant 0 : i32
    %c0_i32_33 = arith.constant 0 : i32
    %c0_i32_34 = arith.constant 0 : i32
    %c0_i32_35 = arith.constant 0 : i32
    %16 = tpu.memref_slice %arg1[%c0_i32_32, %c0_i32_33, %c0_i32_34, %c0_i32_35] : memref<2x8x16x16xf32, #tpu.memory_space<any>> -> memref<2x8x16x16xf32, #tpu.memory_space<any>>
    %c0_i32_36 = arith.constant 0 : i32
    %c4_i32_37 = arith.constant 4 : i32
    %c0_i32_38 = arith.constant 0 : i32
    %c0_i32_39 = arith.constant 0 : i32
    %17 = tpu.memref_slice %arg3[%c0_i32_36, %c4_i32_37, %c0_i32_38, %c0_i32_39] : memref<2x16x16x16xf32, #tpu.memory_space<any>> -> memref<2x8x16x16xf32, #tpu.memory_space<any>>
    %18 = tpu.memref_slice %arg4[%c1_i32_31] : memref<3x!tpu.dma_semaphore, #tpu.memory_space<semaphore_mem>> -> memref<1x!tpu.dma_semaphore, #tpu.memory_space<semaphore_mem>>
    %19 = tpu.memref_squeeze %18 : memref<1x!tpu.dma_semaphore, #tpu.memory_space<semaphore_mem>> -> memref<!tpu.dma_semaphore, #tpu.memory_space<semaphore_mem>>
    tpu.wait_dma2 semaphore(%19 : memref<!tpu.dma_semaphore, #tpu.memory_space<semaphore_mem>>) src(%16 : memref<2x8x16x16xf32, #tpu.memory_space<any>>) dst(%17 : memref<2x8x16x16xf32, #tpu.memory_space<any>>)
    %c2_i32_40 = arith.constant 2 : i32
    %c0_i32_41 = arith.constant 0 : i32
    %c0_i32_42 = arith.constant 0 : i32
    %c0_i32_43 = arith.constant 0 : i32
    %c0_i32_44 = arith.constant 0 : i32
    %20 = tpu.memref_slice %arg2[%c0_i32_41, %c0_i32_42, %c0_i32_43, %c0_i32_44] : memref<2x4x16x16xf32, #tpu.memory_space<any>> -> memref<2x4x16x16xf32, #tpu.memory_space<any>>
    %c0_i32_45 = arith.constant 0 : i32
    %c12_i32_46 = arith.constant 12 : i32
    %c0_i32_47 = arith.constant 0 : i32
    %c0_i32_48 = arith.constant 0 : i32
    %21 = tpu.memref_slice %arg3[%c0_i32_45, %c12_i32_46, %c0_i32_47, %c0_i32_48] : memref<2x16x16x16xf32, #tpu.memory_space<any>> -> memref<2x4x16x16xf32, #tpu.memory_space<any>>
    %22 = tpu.memref_slice %arg4[%c2_i32_40] : memref<3x!tpu.dma_semaphore, #tpu.memory_space<semaphore_mem>> -> memref<1x!tpu.dma_semaphore, #tpu.memory_space<semaphore_mem>>
    %23 = tpu.memref_squeeze %22 : memref<1x!tpu.dma_semaphore, #tpu.memory_space<semaphore_mem>> -> memref<!tpu.dma_semaphore, #tpu.memory_space<semaphore_mem>>
    tpu.wait_dma2 semaphore(%23 : memref<!tpu.dma_semaphore, #tpu.memory_space<semaphore_mem>>) src(%20 : memref<2x4x16x16xf32, #tpu.memory_space<any>>) dst(%21 : memref<2x4x16x16xf32, #tpu.memory_space<any>>)
    return
  }
}

</mosaic_0001>

<bundles_post_ra>
// kernel: tpu_custom_call.1
= control target key start
LH: loop header
LB: loop body
LE: loop exit
PB: predicated region body
PF: predicated region fallthrough
CT: control target
= control target key end

     0   :  { %s122_s12 = smov 1024   ;;  %s123_s13 = smov 4096   ;;  %s172_s0 = inlined_call_operand.hbm [shape: f32[2,4,16,16], index: 0, kind: input, shape index: {}]   ;;  %s173_s1 = inlined_call_operand.hbm [shape: f32[2,8,16,16], index: 1, kind: input, shape index: {}]   ;;  %s174_s2 = inlined_call_operand.hbm [shape: f32[2,4,16,16], index: 2, kind: input, shape index: {}]   ;;  %s175_s3 = inlined_call_operand.hbm [shape: f32[2,16,16,16], index: 3, kind: output, shape index: {}]  }
   0x1   :  { %20 = sst [smem:[#allocation4]] %s122_s12  ;;  %s124_s14 = smov 64  }
   0x2   :  { %22 = sst [smem:[#allocation4 + $0x1]] %s123_s13  ;;  %s125_s15 = smov [#allocation2]  }
   0x3   :  { %24 = sst [smem:[#allocation4 + $0x2]] %s124_s14  ;;  %s126_s16 = smov [#allocation3]  }
   0x4   :  { %s127_s17 = smov 0   ;;  %s128_s22 = smov 2048  }
   0x5   :  { %26 = dma.general %s172_s0, 2048, %s175_s3, %s125_s15, %s126_s16, [#allocation4], %s127_s17, 0  }
   0x6   :  { %41 = sst [smem:[#allocation6]] %s128_s22  ;;  %s27_s25 = scalar_lea.hbm %s175_s3, 1024 }
   0x7   :  { %43 = sst [smem:[#allocation6 + $0x1]] %s123_s13  ;;  %s129_s26 = smov 128  }
   0x8   :  { %45 = sst [smem:[#allocation6 + $0x2]] %s129_s26  ;;  %s48_s29 = scalar_lea.hbm %s175_s3, 3072 }
   0x9   :  { %s130_s30 = smov [#allocation2 + $0x1]   ;;  %s131_s4 = smov [#allocation5]  }
   0xa   :  { %47 = dma.general %s173_s1, 4096, %s27_s25, %s130_s30, %s131_s4, [#allocation6], %s127_s17, 0  }
   0xb   :  { %62 = sst [smem:[#allocation8]] %s122_s12  ;;  %s132_s0 = smov [#allocation2 + $0x2]  }
   0xc   :  { %64 = sst [smem:[#allocation8 + $0x1]] %s123_s13  ;;  %s133_s7 = smov [#allocation7]  }
   0xd   :  { %66 = sst [smem:[#allocation8 + $0x2]] %s124_s14 }
   0xe   :  { %68 = dma.general %s174_s2, 2048, %s48_s29, %s132_s0, %s133_s7, [#allocation8], %s127_s17, 0  }
   0xf   :  { %116 = dma.done.wait [#allocation2], 2048 }
  0x10   :  { %117 = vsyncadd [#allocation2], 4294965248 }
  0x11   :  { %118 = dma.done.wait [#allocation2 + $0x1], 4096 }
  0x12   :  { %119 = vsyncadd [#allocation2 + $0x1], 4294963200 }
  0x13   :  { %120 = dma.done.wait [#allocation2 + $0x2], 2048 }
  0x14   :  { %121 = vsyncadd [#allocation2 + $0x2], 4294965248 }
  0x15   :  { %81 = vsyncmov [#allocation2] }
  0x18   :  { %s82_s3 = vpop.sfrf %81 }
  0x19   :  { %p101_p0 = scmp.ne.s32.totalorder %s82_s3, 0 }
  0x1b   :  { %86 = shalt.err (%p101_p0)  }
  0x1c   :  { %88 = vsyncmov [#allocation2 + $0x1] }
  0x1f   :  { %s89_s1 = vpop.sfrf %88 }
  0x20   :  { %p102_p1 = scmp.ne.s32.totalorder %s89_s1, 0 }
  0x22   :  { %93 = shalt.err (%p102_p1)  }
  0x23   :  { %95 = vsyncmov [#allocation2 + $0x2] }
  0x26   :  { %s96_s10 = vpop.sfrf %95 }
  0x27   :  { %p103_p2 = scmp.ne.s32.totalorder %s96_s10, 0 }
  0x29   :  { %100 = shalt.err (%p103_p2)  }

</bundles_post_ra>
